<compile_context>
chip_gen: v5e
topology: v5e:2x2
jax: 0.10.0
libtpu: 0.0.40
codegen_flags: <defaults>
</compile_context>

<pallas_src>
import jax
import jax.numpy as jnp
from jax.experimental import pallas as pl
from jax.experimental.pallas import tpu as pltpu

_LANE = 128
_SLAB_COLS = 2048                      # fallback slab width: 16 * 128 lanes
_BLOCK_BYTES = 8 * 1024 * 1024         # ~8 MiB per block (dtype-independent)
_MAX_BLOCK_BYTES = 10 * 1024 * 1024    # largest single block we allow in VMEM
_VMEM_LIMIT = 48 * 1024 * 1024         # 2 bufs x (in + out) x 10 MiB + headroom


def _crelu_kernel(x_ref, o_ref):
    # Pure elementwise clamp on the whole VMEM tile (2 VALU ops / vreg,
    # HBM-bound).  Weak-typed 0/1 bounds keep the input dtype and propagate
    # NaN exactly like torch.clamp(x, 0, 1).
    o_ref[...] = jnp.clip(x_ref[...], 0, 1)


def _run_2d(view, tile_rows, grid_m, vmem_limit_bytes, input_output_aliases):
    rows, cols = view.shape
    itemsize = jnp.dtype(view.dtype).itemsize
    n = rows * cols
    return pl.pallas_call(
        _crelu_kernel,
        out_shape=jax.ShapeDtypeStruct((rows, cols), view.dtype),
        grid=(grid_m,),
        in_specs=[pl.BlockSpec((tile_rows, cols), lambda i: (i, 0))],
        out_specs=pl.BlockSpec((tile_rows, cols), lambda i: (i, 0)),
        compiler_params=pltpu.CompilerParams(
            dimension_semantics=("parallel",),
            vmem_limit_bytes=vmem_limit_bytes,
        ),
        cost_estimate=pl.CostEstimate(
            flops=2 * n, transcendentals=0, bytes_accessed=2 * n * itemsize),
        input_output_aliases=input_output_aliases,
    )(view)


def crelu(x, *, block_bytes=_BLOCK_BYTES, vmem_limit_bytes=_VMEM_LIMIT,
          donate=False):
    """Clamped ReLU via a tiled Pallas TPU kernel.

    Any shape/dtype.  Real activation shapes take a zero-copy path (reshape
    to (rows, last_dim), tile rows); only pathological lane-unfriendly inputs
    fall back to a minimally padded 2048-wide slab.
    Set donate=True (and donate x at the jit call site) to alias the output
    onto the input buffer.
    """
    orig_shape = x.shape
    n = x.size
    if n == 0:
        return x
    itemsize = jnp.dtype(x.dtype).itemsize
    aliases = {0: 0} if donate else {}

    # ---------- fast path: free reshape to (rows, cols), no pad, no slice ----
    if x.ndim >= 2:
        cols = x.shape[-1]
    elif n % _LANE == 0:
        cols = _SLAB_COLS
        while n % cols:
            cols //= 2                 # terminates at >=128 (n % 128 == 0)
    else:
        cols = n                       # 0-D / lane-unfriendly 1-D: single row
    rows = n // cols

    row_bytes = cols * itemsize
    tile_rows = max(8, (block_bytes // max(row_bytes, 1)) // 8 * 8)
    if tile_rows >= rows:
        tile_rows, grid_m = rows, 1    # block == full array dims: always legal
    else:
        grid_m = pl.cdiv(rows, tile_rows)   # partial last block: masked store

    if tile_rows * row_bytes <= _MAX_BLOCK_BYTES:
        out = _run_2d(x.reshape(rows, cols), tile_rows, grid_m,
                      vmem_limit_bytes, aliases)
        return out.reshape(orig_shape)

    # ---------- fallback: lane-unfriendly huge input -> minimally padded slab
    flat = x.reshape(-1)
    rows = pl.cdiv(n, _SLAB_COLS)      # NOT rounded up to a block multiple
    padded = rows * _SLAB_COLS
    if padded != n:
        flat = jnp.pad(flat, (0, padded - n))   # <= 2047 elements of padding
    slab = flat.reshape(rows, _SLAB_COLS)

    tile_rows = max(8, (block_bytes // (_SLAB_COLS * itemsize)) // 8 * 8)
    if tile_rows >= rows:
        tile_rows, grid_m = rows, 1
    else:
        grid_m = pl.cdiv(rows, tile_rows)
    out = _run_2d(slab, tile_rows, grid_m, vmem_limit_bytes, {})
    return out.reshape(-1)[:n].reshape(orig_shape)


if __name__ == "__main__":
    key = jax.random.PRNGKey(0)
    k1, k2, k3 = jax.random.split(key, 3)

    # NNUE-ish hidden activations: batch=16, hidden=256 (fast path, 1 block).
    x1 = jax.random.normal(k1, (16, 256), dtype=jnp.float32) * 2.0
    y1 = jax.block_until_ready(crelu(x1))
    assert y1.shape == x1.shape and y1.dtype == x1.dtype
    assert jnp.allclose(y1, jnp.clip(x1, 0.0, 1.0)), "mismatch (16,256) f32"

    # Ragged, non-aligned shape: fast path, single full-dims block, no pad.
    x2 = jax.random.normal(k2, (3, 5, 37), dtype=jnp.float32) * 3.0
    y2 = jax.block_until_ready(crelu(x2))
    assert y2.shape == x2.shape and y2.dtype == x2.dtype
    assert jnp.allclose(y2, jnp.clip(x2, 0.0, 1.0)), "mismatch (3,5,37) f32"

    # 1-D lane-friendly bf16: exercises the 1-D reshape path + narrow dtype.
    x3 = (jax.random.normal(k3, (4096,), dtype=jnp.float32) * 2.0
          ).astype(jnp.bfloat16)
    y3 = jax.block_until_ready(crelu(x3))
    assert y3.shape == x3.shape and y3.dtype == x3.dtype
    assert jnp.allclose(y3.astype(jnp.float32),
                        jnp.clip(x3, 0, 1).astype(jnp.float32)), "mismatch 1-D bf16"

    print("KERNEL_OK")
</pallas_src>

<mosaic_0001>
module attributes {stable_mosaic.version = 11 : i64} {
  func.func @_crelu_kernel(%arg0: i32, %arg1: memref<16x256xf32, #tpu.memory_space<vmem>>, %arg2: memref<16x256xf32, #tpu.memory_space<vmem>>) attributes {dimension_semantics = [#tpu.dimension_semantics<parallel>], iteration_bounds = array<i64: 1>, scalar_prefetch = 0 : i64, scratch_operands = 0 : i64, tpu.core_type = #tpu.core_type<tc>, window_params = [{transform_indices = @transform_0, window_bounds = array<i64: 16, 256>}, {transform_indices = @transform_1, window_bounds = array<i64: 16, 256>}]} {
    %c0 = arith.constant 0 : index
    %c0_0 = arith.constant 0 : index
    %0 = vector.load %arg1[%c0, %c0_0] : memref<16x256xf32, #tpu.memory_space<vmem>>, vector<16x256xf32>
    %c0_i32 = arith.constant 0 : i32
    %c1_i32 = arith.constant 1 : i32
    %1 = arith.sitofp %c0_i32 : i32 to f32
    %2 = vector.broadcast %1 : f32 to vector<16x256xf32>
    %3 = arith.maximumf %2, %0 : vector<16x256xf32>
    %4 = arith.sitofp %c1_i32 : i32 to f32
    %5 = vector.broadcast %4 : f32 to vector<16x256xf32>
    %6 = arith.minimumf %5, %3 : vector<16x256xf32>
    %c0_1 = arith.constant 0 : index
    %c0_2 = arith.constant 0 : index
    %7 = vector.load %arg2[%c0_1, %c0_2] : memref<16x256xf32, #tpu.memory_space<vmem>>, vector<16x256xf32>
    tpu.vector_store %arg2[%c0_1, %c0_2], %6 {strides = array<i32>} : memref<16x256xf32, #tpu.memory_space<vmem>>, vector<16x256xf32>,
    return
  }
  func.func @transform_0(%arg0: i32) -> (i32, i32) {
    %c0_i32 = arith.constant 0 : i32
    %c0_i32_0 = arith.constant 0 : i32
    return %arg0, %c0_i32 : i32, i32
  }
  func.func @transform_1(%arg0: i32) -> (i32, i32) {
    %c0_i32 = arith.constant 0 : i32
    %c0_i32_0 = arith.constant 0 : i32
    return %arg0, %c0_i32 : i32, i32
  }
}

</mosaic_0001>

<bundles_post_ra>
// kernel: tpu_custom_call.1
= control target key start
LH: loop header
LB: loop body
LE: loop exit
PB: predicated region body
PF: predicated region fallthrough
CT: control target
= control target key end

     0   :  { %6 = vsyncpa [#allocation3], 0  ;;  %s136_s0 = inlined_call_operand.hbm [shape: f32[16,256], index: 0, kind: input, shape index: {}]   ;;  %s137_s1 = inlined_call_operand.hbm [shape: f32[16,256], index: 1, kind: output, shape index: {}]  }
   0x1   :  { %7 = vsyncpa [#allocation4], 0  ;;  %s12_s8 = sshll.u32 %s136_s0, 4  ;;  %s116_s9 = smov [#allocation2]   ;;  %s13_s8 = int_to_ptr.hbm [resolvable:$true] %s12_s8 }
   0x2   :  { %s14_s10 = sshll.u32 %s116_s9, 4  ;;  %s117_s11 = smov 256   ;;  %s15_s10 = int_to_ptr.vmem [resolvable:$true] %s14_s10 }
   0x3   :  { %s118_s12 = smov 16  }
   0x4   :  { %20 = dma.hbm_to_vmem [thread:$0]  %s13_s8, 512, %s15_s10, [#allocation3], %s117_s11, %s117_s11, %s118_s12  }
   0x5   :  { %112 = dma.done.wait [#allocation3], 512  }
   0x6   :  { %113 = vsyncadd [#allocation3], 4294966784  ;;  %v25_v0 = vld [vmem:[#allocation2] sm:$0xff]  ;;  %v26_v1 = vld [vmem:[#allocation2 + $0x8] sm:$0xff]  ;;  %s119_s0 = smov [#allocation5]   ;;  %s47_s16 = sshll.u32 %s137_s1, 4  ;;  %s48_s16 = int_to_ptr.hbm [resolvable:$true] %s47_s16 }
   0x7   :  { %v27_v2 = vld [vmem:[#allocation2 + $0x10] sm:$0xff]  ;;  %v29_v3 = vmax.f32 %v25_v0, 0.0  ;;  %v30_v4 = vmax.f32 %v26_v1, 0.0  ;;  %v28_v6 = vld [vmem:[#allocation2 + $0x18] sm:$0xff]  ;;  %s45_s13 = sshll.u32 %s119_s0, 4  ;;  %s46_s13 = int_to_ptr.vmem [resolvable:$true] %s45_s13 }
   0x8   :  { %v31_v5 = vmax.f32 %v27_v2, 0.0  ;;  %v32_v7 = vmax.f32 %v28_v6, 0.0 }
   0x9   :  { %v33_v8 = vmin.f32 %v29_v3, 1.0  ;;  %v34_v9 = vmin.f32 %v30_v4, 1.0 }
   0xa   :  { %v35_v10 = vmin.f32 %v31_v5, 1.0  ;;  %v36_v11 = vmin.f32 %v32_v7, 1.0 }
   0xb   :  { %37 = vst [vmem:[#allocation5] sm:$0xff] %v33_v8 }
   0xc   :  { %38 = vst [vmem:[#allocation5 + $0x8] sm:$0xff] %v34_v9 }
   0xd   :  { %39 = vst [vmem:[#allocation5 + $0x10] sm:$0xff] %v35_v10 }
   0xe   :  { %40 = vst [vmem:[#allocation5 + $0x18] sm:$0xff] %v36_v11 }
   0xf   :  { %53 = dma.vmem_to_hbm [thread:$0]  %s46_s13, 512, %s48_s16, [#allocation4], %s117_s11, %s117_s11, %s118_s12  }
  0x10   :  { %114 = dma.done.wait [#allocation4], 512  }
  0x11   :  { %115 = vsyncadd [#allocation4], 4294966784 }
  0x12   :  { %58 = vsyncpa [#allocation3], 1 }
  0x13   :  { %59 = vsyncpa [#allocation4], 1 }

</bundles_post_ra>
